<compile_context>
chip_gen: v7x
topology: tpu7x:2x2x1
jax: 0.10.0
libtpu: 0.0.40
codegen_flags: <defaults>
</compile_context>

<pallas_src>
import itertools

import numpy as np
import jax
import jax.numpy as jnp
from jax.experimental import pallas as pl
from jax.experimental.pallas import tpu as pltpu

_INT_MAX = 2 ** 31 - 1
_LANES = 128


def _round_up(x, m):
    return ((x + m - 1) // m) * m


# ------------------------------ fused kernel -------------------------------- #

def _make_solver(U, T, num_cand, tile_p):
    """Builds the fused pallas_call for a (U, T) cost matrix and P candidates."""
    num_tiles = pl.cdiv(num_cand, tile_p)
    p_pad = num_tiles * tile_p

    def kernel(cost_t_ref, cand_ref, ict_ref, amin_ref, bcost_ref, bidx_ref,
               red_scr):
        step = pl.program_id(0)

        # -- step 0: quantization, reduced costs, per-uni argmin, init best --
        @pl.when(step == 0)
        def _init():
            ct = cost_t_ref[...]                               # (T, U) f32
            ict = (100.0 * ct).astype(jnp.int32)               # int(100*c), trunc toward 0
            cmin = jnp.min(ict, axis=0, keepdims=True)         # (1, U) per-uni min
            red_scr[...] = ict - cmin                          # reduced costs >= 0
            ict_ref[...] = ict
            r_iota = jax.lax.broadcasted_iota(jnp.int32, (T, U), 0)
            amin_ref[...] = jnp.min(jnp.where(ict == cmin, r_iota, T),
                                    axis=0, keepdims=True)     # cheapest target per uni
            bcost_ref[...] = jnp.full((1, 1), _INT_MAX, jnp.int32)
            bidx_ref[...] = jnp.zeros((1, 1), jnp.int32)

        # -- every step: one lane-dense tile of candidate coverings --
        cand = cand_ref[...]                                   # (T, tile_p) int32
        red = red_scr[...]                                     # (T, U) int32
        contrib = jnp.zeros((T, tile_p), jnp.int32)
        for u in range(U):                                     # static unroll, U is small
            contrib = contrib + jnp.where(cand == u, red[:, u:u + 1], 0)
        costs = jnp.sum(contrib, axis=0, keepdims=True)        # (1, tile_p)

        p_global = step * tile_p + jax.lax.broadcasted_iota(jnp.int32, (1, tile_p), 1)
        costs = jnp.where(p_global < num_cand, costs, _INT_MAX)
        tile_min = jnp.min(costs, axis=1, keepdims=True)       # (1, 1)
        tile_arg = jnp.min(jnp.where(costs == tile_min, p_global, _INT_MAX),
                           axis=1, keepdims=True)              # (1, 1)
        better = tile_min < bcost_ref[...]
        bidx_ref[...] = jnp.where(better, tile_arg, bidx_ref[...])
        bcost_ref[...] = jnp.where(better, tile_min, bcost_ref[...])

    grid_spec = pltpu.PrefetchScalarGridSpec(
        num_scalar_prefetch=0,
        grid=(num_tiles,),
        in_specs=[pl.BlockSpec((T, U), lambda i: (0, 0)),          # tiny cost table
                  pl.BlockSpec((T, tile_p), lambda i: (0, i))],    # candidate tile
        out_specs=(pl.BlockSpec((T, U), lambda i: (0, 0)),         # int costs (transposed)
                   pl.BlockSpec((1, U), lambda i: (0, 0)),         # per-uni argmin target
                   pl.BlockSpec((1, 1), lambda i: (0, 0)),         # best candidate cost
                   pl.BlockSpec((1, 1), lambda i: (0, 0))),        # best candidate index
        scratch_shapes=[pltpu.VMEM((T, U), jnp.int32)],            # reduced costs
    )

    call = pl.pallas_call(
        kernel,
        grid_spec=grid_spec,
        out_shape=(jax.ShapeDtypeStruct((T, U), jnp.int32),
                   jax.ShapeDtypeStruct((1, U), jnp.int32),
                   jax.ShapeDtypeStruct((1, 1), jnp.int32),
                   jax.ShapeDtypeStruct((1, 1), jnp.int32)),
        # Outputs carry the running best across the P axis -> "arbitrary".
        # TODO(synk): for v7x megacore, split P across 2 cores with per-core
        # partial bests and a tiny combine step.
        compiler_params=pltpu.CompilerParams(
            dimension_semantics=("arbitrary",)),
    )

    @jax.jit
    def run(cost, cand_t_pad):
        # Whole device pipeline under one jit: transpose + fused kernel.
        return call(jnp.transpose(cost), cand_t_pad)

    return run, p_pad


# --------------------------------- wrapper ----------------------------------- #

def min_cost_max_flow_unseen(cost_matrix, tile_p=512):
    """Replicates MinCostMaxFlow_Unseen.forward: returns (src, tgt, icost)."""
    cost = jnp.asarray(cost_matrix, jnp.float32)
    U, T = cost.shape
    assert U >= T, "flow is only feasible when uni_class >= target_class"

    # TODO(synk): the OR-tools network-simplex solver itself has no Pallas
    # equivalent; we exploit the cap-1 bipartite structure: pick one distinct
    # "representative" uni per target (swept exhaustively in-kernel), every
    # other uni takes its row-argmin. Candidate count is U!/(U-T)!, so this
    # only scales to small U, T.
    cand = np.array(list(itertools.permutations(range(U), T)), dtype=np.int32)  # (P, T)
    P = cand.shape[0]
    cand_t = np.ascontiguousarray(cand.T)                                       # (T, P)

    # Lane-dense tile over P; 512 lanes keeps double-buffered VMEM tiny on all
    # generations (v5e/v6e could go 4-8K wide; re-derive for v7x's 64 MiB VMEM).
    # Candidates could be int8/int16 to cut DMA bytes for huge P; int32 kept
    # here for robust lowering at these sizes.
    tp = _round_up(min(tile_p, _round_up(P, _LANES)), _LANES)
    run, p_pad = _make_solver(U, T, P, tp)

    cand_t_pad = np.zeros((T, p_pad), np.int32)
    cand_t_pad[:, :P] = cand_t

    # Single fused pallas_call; single device->host sync.
    outs = jax.block_until_ready(run(cost, jnp.asarray(cand_t_pad)))
    ict_t, amin, _best_cost, best_idx = (np.asarray(o) for o in outs)

    best = int(best_idx[0, 0])
    reps = cand[best]                              # reps[j] = uni covering target j
    assign = amin[0].astype(np.int64).copy()       # default: cheapest target per uni
    for j, i in enumerate(reps):
        assign[int(i)] = j

    src = list(range(U))                           # arc order => each uni once, ascending
    tgt = [int(assign[i]) for i in range(U)]
    return src, tgt, ict_t.T                       # icost back in (U, T) layout


# ----------------------------------- main ------------------------------------ #

if __name__ == "__main__":
    key = jax.random.PRNGKey(0)
    U, T = 8, 4                                    # uni_class=8, target_class=4
    cost = jax.random.uniform(key, (U, T), dtype=jnp.float32)

    src, tgt, icost_np = min_cost_max_flow_unseen(cost)

    # --- sanity check against brute force over all surjective assignments ---
    total = int(icost_np[np.arange(U), np.array(tgt)].sum())
    best_bf = None
    for f in itertools.product(range(T), repeat=U):
        if len(set(f)) == T:                       # every target covered
            c = int(icost_np[np.arange(U), np.array(f)].sum())
            best_bf = c if best_bf is None else min(best_bf, c)

    assert len(src) == U and src == list(range(U))
    assert set(tgt) == set(range(T)), "every target class must be covered"
    assert total == best_bf, f"suboptimal assignment: {total} vs {best_bf}"

    print("KERNEL_OK")
</pallas_src>

<mosaic_0001>
module attributes {stable_mosaic.version = 11 : i64} {
  func.func @kernel(%arg0: i32, %arg1: memref<4x8xf32, #tpu.memory_space<vmem>>, %arg2: memref<4x512xi32, #tpu.memory_space<vmem>>, %arg3: memref<4x8xi32, #tpu.memory_space<vmem>>, %arg4: memref<1x8xi32, #tpu.memory_space<vmem>>, %arg5: memref<1x1xi32, #tpu.memory_space<vmem>>, %arg6: memref<1x1xi32, #tpu.memory_space<vmem>>, %arg7: memref<4x8xi32, #tpu.memory_space<vmem>>) attributes {dimension_semantics = [#tpu.dimension_semantics<arbitrary>], iteration_bounds = array<i64: 4>, scalar_prefetch = 0 : i64, scratch_operands = 1 : i64, tpu.core_type = #tpu.core_type<tc>, window_params = [{pipeline_mode = #tpu.pipeline_mode<synchronous>, transform_indices = @transform_0, window_bounds = array<i64: 4, 8>}, {transform_indices = @transform_1, window_bounds = array<i64: 4, 512>}, {pipeline_mode = #tpu.pipeline_mode<synchronous>, transform_indices = @transform_2, window_bounds = array<i64: 4, 8>}, {pipeline_mode = #tpu.pipeline_mode<synchronous>, transform_indices = @transform_3, window_bounds = array<i64: 1, 8>}, {pipeline_mode = #tpu.pipeline_mode<synchronous>, transform_indices = @transform_4, window_bounds = array<i64: 1, 1>}, {pipeline_mode = #tpu.pipeline_mode<synchronous>, transform_indices = @transform_5, window_bounds = array<i64: 1, 1>}]} {
    %c0_i32 = arith.constant 0 : i32
    %0 = arith.cmpi eq, %arg0, %c0_i32 : i32
    %1 = arith.extui %0 : i1 to i32
    %c0_i32_0 = arith.constant 0 : i32
    %2 = arith.cmpi ne, %1, %c0_i32_0 : i32
    scf.if %2 {
      %c0_27 = arith.constant 0 : index
      %c0_28 = arith.constant 0 : index
      %96 = vector.load %arg1[%c0_27, %c0_28] : memref<4x8xf32, #tpu.memory_space<vmem>>, vector<4x8xf32>
      %cst_29 = arith.constant 1.000000e+02 : f32
      %97 = vector.broadcast %cst_29 : f32 to vector<4x8xf32>
      %98 = arith.mulf %97, %96 : vector<4x8xf32>
      %99 = arith.fptosi %98 : vector<4x8xf32> to vector<4x8xi32>
      %cst_30 = arith.constant dense<2147483647> : vector<8xi32>
      %100 = vector.multi_reduction <minsi>, %99, %cst_30 [0] : vector<4x8xi32> to vector<8xi32>
      %101 = vector.shape_cast %100 : vector<8xi32> to vector<1x8xi32>
      %102 = vector.broadcast %101 : vector<1x8xi32> to vector<4x8xi32>
      %103 = arith.subi %99, %102 : vector<4x8xi32>
      %c0_31 = arith.constant 0 : index
      %c0_32 = arith.constant 0 : index
      %104 = vector.load %arg7[%c0_31, %c0_32] : memref<4x8xi32, #tpu.memory_space<vmem>>, vector<4x8xi32>
      tpu.vector_store %arg7[%c0_31, %c0_32], %103 {strides = array<i32>} : memref<4x8xi32, #tpu.memory_space<vmem>>, vector<4x8xi32>,
      %c0_33 = arith.constant 0 : index
      %c0_34 = arith.constant 0 : index
      %105 = vector.load %arg3[%c0_33, %c0_34] : memref<4x8xi32, #tpu.memory_space<vmem>>, vector<4x8xi32>
      tpu.vector_store %arg3[%c0_33, %c0_34], %99 {strides = array<i32>} : memref<4x8xi32, #tpu.memory_space<vmem>>, vector<4x8xi32>,
      %106 = tpu.iota {dimensions = array<i32: 0>} : vector<4x8xi32>
      %107 = vector.broadcast %101 : vector<1x8xi32> to vector<4x8xi32>
      %108 = arith.cmpi eq, %99, %107 : vector<4x8xi32>
      %c4_i32_35 = arith.constant 4 : i32
      %109 = vector.broadcast %c4_i32_35 : i32 to vector<4x8xi32>
      %110 = arith.select %108, %106, %109 : vector<4x8xi1>, vector<4x8xi32>
      %cst_36 = arith.constant dense<2147483647> : vector<8xi32>
      %111 = vector.multi_reduction <minsi>, %110, %cst_36 [0] : vector<4x8xi32> to vector<8xi32>
      %112 = vector.shape_cast %111 : vector<8xi32> to vector<1x8xi32>
      %c0_37 = arith.constant 0 : index
      %c0_38 = arith.constant 0 : index
      %113 = vector.load %arg4[%c0_37, %c0_38] : memref<1x8xi32, #tpu.memory_space<vmem>>, vector<1x8xi32>
      tpu.vector_store %arg4[%c0_37, %c0_38], %112 {strides = array<i32>} : memref<1x8xi32, #tpu.memory_space<vmem>>, vector<1x8xi32>,
      %c2147483647_i32_39 = arith.constant 2147483647 : i32
      %114 = vector.broadcast %c2147483647_i32_39 : i32 to vector<1x1xi32>
      %c0_40 = arith.constant 0 : index
      %c0_41 = arith.constant 0 : index
      %115 = vector.load %arg5[%c0_40, %c0_41] : memref<1x1xi32, #tpu.memory_space<vmem>>, vector<1x1xi32>
      tpu.vector_store %arg5[%c0_40, %c0_41], %114 {strides = array<i32>} : memref<1x1xi32, #tpu.memory_space<vmem>>, vector<1x1xi32>,
      %c0_i32_42 = arith.constant 0 : i32
      %116 = vector.broadcast %c0_i32_42 : i32 to vector<1x1xi32>
      %c0_43 = arith.constant 0 : index
      %c0_44 = arith.constant 0 : index
      %117 = vector.load %arg6[%c0_43, %c0_44] : memref<1x1xi32, #tpu.memory_space<vmem>>, vector<1x1xi32>
      tpu.vector_store %arg6[%c0_43, %c0_44], %116 {strides = array<i32>} : memref<1x1xi32, #tpu.memory_space<vmem>>, vector<1x1xi32>,
    } else {
    }
    %c0 = arith.constant 0 : index
    %c0_1 = arith.constant 0 : index
    %3 = vector.load %arg2[%c0, %c0_1] : memref<4x512xi32, #tpu.memory_space<vmem>>, vector<4x512xi32>
    %c0_2 = arith.constant 0 : index
    %c0_3 = arith.constant 0 : index
    %4 = vector.load %arg7[%c0_2, %c0_3] : memref<4x8xi32, #tpu.memory_space<vmem>>, vector<4x8xi32>
    %c0_i32_4 = arith.constant 0 : i32
    %5 = vector.broadcast %c0_i32_4 : i32 to vector<4x512xi32>
    %c0_i32_5 = arith.constant 0 : i32
    %6 = vector.broadcast %c0_i32_5 : i32 to vector<4x512xi32>
    %7 = arith.cmpi eq, %3, %6 : vector<4x512xi32>
    %8 = vector.extract_strided_slice %4 {offsets = [0, 0], sizes = [4, 1], strides = [1, 1]} : vector<4x8xi32> to vector<4x1xi32>
    %c0_i32_6 = arith.constant 0 : i32
    %9 = vector.shape_cast %8 : vector<4x1xi32> to vector<4x1xi32>
    %10 = vector.broadcast %9 : vector<4x1xi32> to vector<4x512xi32>
    %11 = vector.broadcast %c0_i32_6 : i32 to vector<4x512xi32>
    %12 = arith.select %7, %10, %11 : vector<4x512xi1>, vector<4x512xi32>
    %13 = arith.addi %5, %12 : vector<4x512xi32>
    %c1_i32 = arith.constant 1 : i32
    %14 = vector.broadcast %c1_i32 : i32 to vector<4x512xi32>
    %15 = arith.cmpi eq, %3, %14 : vector<4x512xi32>
    %16 = vector.extract_strided_slice %4 {offsets = [0, 1], sizes = [4, 1], strides = [1, 1]} : vector<4x8xi32> to vector<4x1xi32>
    %c0_i32_7 = arith.constant 0 : i32
    %17 = vector.shape_cast %16 : vector<4x1xi32> to vector<4x1xi32>
    %18 = vector.broadcast %17 : vector<4x1xi32> to vector<4x512xi32>
    %19 = vector.broadcast %c0_i32_7 : i32 to vector<4x512xi32>
    %20 = arith.select %15, %18, %19 : vector<4x512xi1>, vector<4x512xi32>
    %21 = arith.addi %13, %20 : vector<4x512xi32>
    %c2_i32 = arith.constant 2 : i32
    %22 = vector.broadcast %c2_i32 : i32 to vector<4x512xi32>
    %23 = arith.cmpi eq, %3, %22 : vector<4x512xi32>
    %24 = vector.extract_strided_slice %4 {offsets = [0, 2], sizes = [4, 1], strides = [1, 1]} : vector<4x8xi32> to vector<4x1xi32>
    %c0_i32_8 = arith.constant 0 : i32
    %25 = vector.shape_cast %24 : vector<4x1xi32> to vector<4x1xi32>
    %26 = vector.broadcast %25 : vector<4x1xi32> to vector<4x512xi32>
    %27 = vector.broadcast %c0_i32_8 : i32 to vector<4x512xi32>
    %28 = arith.select %23, %26, %27 : vector<4x512xi1>, vector<4x512xi32>
    %29 = arith.addi %21, %28 : vector<4x512xi32>
    %c3_i32 = arith.constant 3 : i32
    %30 = vector.broadcast %c3_i32 : i32 to vector<4x512xi32>
    %31 = arith.cmpi eq, %3, %30 : vector<4x512xi32>
    %32 = vector.extract_strided_slice %4 {offsets = [0, 3], sizes = [4, 1], strides = [1, 1]} : vector<4x8xi32> to vector<4x1xi32>
    %c0_i32_9 = arith.constant 0 : i32
    %33 = vector.shape_cast %32 : vector<4x1xi32> to vector<4x1xi32>
    %34 = vector.broadcast %33 : vector<4x1xi32> to vector<4x512xi32>
    %35 = vector.broadcast %c0_i32_9 : i32 to vector<4x512xi32>
    %36 = arith.select %31, %34, %35 : vector<4x512xi1>, vector<4x512xi32>
    %37 = arith.addi %29, %36 : vector<4x512xi32>
    %c4_i32 = arith.constant 4 : i32
    %38 = vector.broadcast %c4_i32 : i32 to vector<4x512xi32>
    %39 = arith.cmpi eq, %3, %38 : vector<4x512xi32>
    %40 = vector.extract_strided_slice %4 {offsets = [0, 4], sizes = [4, 1], strides = [1, 1]} : vector<4x8xi32> to vector<4x1xi32>
    %c0_i32_10 = arith.constant 0 : i32
    %41 = vector.shape_cast %40 : vector<4x1xi32> to vector<4x1xi32>
    %42 = vector.broadcast %41 : vector<4x1xi32> to vector<4x512xi32>
    %43 = vector.broadcast %c0_i32_10 : i32 to vector<4x512xi32>
    %44 = arith.select %39, %42, %43 : vector<4x512xi1>, vector<4x512xi32>
    %45 = arith.addi %37, %44 : vector<4x512xi32>
    %c5_i32 = arith.constant 5 : i32
    %46 = vector.broadcast %c5_i32 : i32 to vector<4x512xi32>
    %47 = arith.cmpi eq, %3, %46 : vector<4x512xi32>
    %48 = vector.extract_strided_slice %4 {offsets = [0, 5], sizes = [4, 1], strides = [1, 1]} : vector<4x8xi32> to vector<4x1xi32>
    %c0_i32_11 = arith.constant 0 : i32
    %49 = vector.shape_cast %48 : vector<4x1xi32> to vector<4x1xi32>
    %50 = vector.broadcast %49 : vector<4x1xi32> to vector<4x512xi32>
    %51 = vector.broadcast %c0_i32_11 : i32 to vector<4x512xi32>
    %52 = arith.select %47, %50, %51 : vector<4x512xi1>, vector<4x512xi32>
    %53 = arith.addi %45, %52 : vector<4x512xi32>
    %c6_i32 = arith.constant 6 : i32
    %54 = vector.broadcast %c6_i32 : i32 to vector<4x512xi32>
    %55 = arith.cmpi eq, %3, %54 : vector<4x512xi32>
    %56 = vector.extract_strided_slice %4 {offsets = [0, 6], sizes = [4, 1], strides = [1, 1]} : vector<4x8xi32> to vector<4x1xi32>
    %c0_i32_12 = arith.constant 0 : i32
    %57 = vector.shape_cast %56 : vector<4x1xi32> to vector<4x1xi32>
    %58 = vector.broadcast %57 : vector<4x1xi32> to vector<4x512xi32>
    %59 = vector.broadcast %c0_i32_12 : i32 to vector<4x512xi32>
    %60 = arith.select %55, %58, %59 : vector<4x512xi1>, vector<4x512xi32>
    %61 = arith.addi %53, %60 : vector<4x512xi32>
    %c7_i32 = arith.constant 7 : i32
    %62 = vector.broadcast %c7_i32 : i32 to vector<4x512xi32>
    %63 = arith.cmpi eq, %3, %62 : vector<4x512xi32>
    %64 = vector.extract_strided_slice %4 {offsets = [0, 7], sizes = [4, 1], strides = [1, 1]} : vector<4x8xi32> to vector<4x1xi32>
    %c0_i32_13 = arith.constant 0 : i32
    %65 = vector.shape_cast %64 : vector<4x1xi32> to vector<4x1xi32>
    %66 = vector.broadcast %65 : vector<4x1xi32> to vector<4x512xi32>
    %67 = vector.broadcast %c0_i32_13 : i32 to vector<4x512xi32>
    %68 = arith.select %63, %66, %67 : vector<4x512xi1>, vector<4x512xi32>
    %69 = arith.addi %61, %68 : vector<4x512xi32>
    %cst = arith.constant dense<0> : vector<512xi32>
    %70 = vector.multi_reduction <add>, %69, %cst [0] : vector<4x512xi32> to vector<512xi32>
    %71 = vector.shape_cast %70 : vector<512xi32> to vector<1x512xi32>
    %c512_i32 = arith.constant 512 : i32
    %72 = arith.muli %arg0, %c512_i32 : i32
    %73 = tpu.iota {dimensions = array<i32: 1>} : vector<1x512xi32>
    %74 = vector.broadcast %72 : i32 to vector<1x512xi32>
    %75 = arith.addi %74, %73 : vector<1x512xi32>
    %c1680_i32 = arith.constant 1680 : i32
    %76 = vector.broadcast %c1680_i32 : i32 to vector<1x512xi32>
    %77 = arith.cmpi slt, %75, %76 : vector<1x512xi32>
    %c2147483647_i32 = arith.constant 2147483647 : i32
    %78 = vector.broadcast %c2147483647_i32 : i32 to vector<1x512xi32>
    %79 = arith.select %77, %71, %78 : vector<1x512xi1>, vector<1x512xi32>
    %cst_14 = arith.constant dense<2147483647> : vector<1xi32>
    %80 = vector.multi_reduction <minsi>, %79, %cst_14 [1] : vector<1x512xi32> to vector<1xi32>
    %81 = vector.shape_cast %80 : vector<1xi32> to vector<1x1xi32>
    %82 = vector.broadcast %81 : vector<1x1xi32> to vector<1x512xi32>
    %83 = arith.cmpi eq, %79, %82 : vector<1x512xi32>
    %c2147483647_i32_15 = arith.constant 2147483647 : i32
    %84 = vector.broadcast %c2147483647_i32_15 : i32 to vector<1x512xi32>
    %85 = arith.select %83, %75, %84 : vector<1x512xi1>, vector<1x512xi32>
    %cst_16 = arith.constant dense<2147483647> : vector<1xi32>
    %86 = vector.multi_reduction <minsi>, %85, %cst_16 [1] : vector<1x512xi32> to vector<1xi32>
    %87 = vector.shape_cast %86 : vector<1xi32> to vector<1x1xi32>
    %c0_17 = arith.constant 0 : index
    %c0_18 = arith.constant 0 : index
    %88 = vector.load %arg5[%c0_17, %c0_18] : memref<1x1xi32, #tpu.memory_space<vmem>>, vector<1x1xi32>
    %89 = arith.cmpi slt, %81, %88 : vector<1x1xi32>
    %c0_19 = arith.constant 0 : index
    %c0_20 = arith.constant 0 : index
    %90 = vector.load %arg6[%c0_19, %c0_20] : memref<1x1xi32, #tpu.memory_space<vmem>>, vector<1x1xi32>
    %91 = arith.select %89, %87, %90 : vector<1x1xi1>, vector<1x1xi32>
    %c0_21 = arith.constant 0 : index
    %c0_22 = arith.constant 0 : index
    %92 = vector.load %arg6[%c0_21, %c0_22] : memref<1x1xi32, #tpu.memory_space<vmem>>, vector<1x1xi32>
    tpu.vector_store %arg6[%c0_21, %c0_22], %91 {strides = array<i32>} : memref<1x1xi32, #tpu.memory_space<vmem>>, vector<1x1xi32>,
    %c0_23 = arith.constant 0 : index
    %c0_24 = arith.constant 0 : index
    %93 = vector.load %arg5[%c0_23, %c0_24] : memref<1x1xi32, #tpu.memory_space<vmem>>, vector<1x1xi32>
    %94 = arith.select %89, %81, %93 : vector<1x1xi1>, vector<1x1xi32>
    %c0_25 = arith.constant 0 : index
    %c0_26 = arith.constant 0 : index
    %95 = vector.load %arg5[%c0_25, %c0_26] : memref<1x1xi32, #tpu.memory_space<vmem>>, vector<1x1xi32>
    tpu.vector_store %arg5[%c0_25, %c0_26], %94 {strides = array<i32>} : memref<1x1xi32, #tpu.memory_space<vmem>>, vector<1x1xi32>,
    return
  }
  func.func @transform_0(%arg0: i32) -> (i32, i32) {
    %c0_i32 = arith.constant 0 : i32
    %c0_i32_0 = arith.constant 0 : i32
    %c0_i32_1 = arith.constant 0 : i32
    return %c0_i32, %c0_i32_0 : i32, i32
  }
  func.func @transform_1(%arg0: i32) -> (i32, i32) {
    %c0_i32 = arith.constant 0 : i32
    %c0_i32_0 = arith.constant 0 : i32
    return %c0_i32, %arg0 : i32, i32
  }
  func.func @transform_2(%arg0: i32) -> (i32, i32) {
    %c0_i32 = arith.constant 0 : i32
    %c0_i32_0 = arith.constant 0 : i32
    %c0_i32_1 = arith.constant 0 : i32
    return %c0_i32, %c0_i32_0 : i32, i32
  }
  func.func @transform_3(%arg0: i32) -> (i32, i32) {
    %c0_i32 = arith.constant 0 : i32
    %c0_i32_0 = arith.constant 0 : i32
    %c0_i32_1 = arith.constant 0 : i32
    return %c0_i32, %c0_i32_0 : i32, i32
  }
  func.func @transform_4(%arg0: i32) -> (i32, i32) {
    %c0_i32 = arith.constant 0 : i32
    %c0_i32_0 = arith.constant 0 : i32
    %c0_i32_1 = arith.constant 0 : i32
    return %c0_i32, %c0_i32_0 : i32, i32
  }
  func.func @transform_5(%arg0: i32) -> (i32, i32) {
    %c0_i32 = arith.constant 0 : i32
    %c0_i32_0 = arith.constant 0 : i32
    %c0_i32_1 = arith.constant 0 : i32
    return %c0_i32, %c0_i32_0 : i32, i32
  }
}

</mosaic_0001>

<bundles_post_ra>
// kernel: run.1
= control target key start
LH: loop header
LB: loop body
LE: loop exit
PB: predicated region body
PF: predicated region fallthrough
CT: control target
= control target key end

     0   :  { %11 = vsyncpa [#allocation4], 0  ;;  %s1299_s0 = inlined_call_operand.hbm [shape: f32[4,8], index: 0, kind: input, shape index: {}]   ;;  %s1300_s1 = inlined_call_operand.hbm [shape: s32[4,2048], index: 1, kind: input, shape index: {}]   ;;  %s1301_s2 = inlined_call_operand.hbm [shape: s32[4,8], index: 2, kind: output, shape index: {0}]   ;;  %s1302_s3 = inlined_call_operand.hbm [shape: s32[1,8], index: 3, kind: output, shape index: {1}]   ;;  %s1303_s4 = inlined_call_operand.hbm [shape: s32[1,1], index: 4, kind: output, shape index: {2}]   ;;  %s1304_s5 = inlined_call_operand.hbm [shape: s32[1,1], index: 5, kind: output, shape index: {3}]  }
   0x1   :  { %12 = vsyncpa [#allocation7], 0 }
   0x2   :  { %14 = vsyncpa [#allocation7 + $0x1], 0 }
   0x3   :  { %15 = vsyncpa [#allocation5], 0 }
   0x4   :  { %16 = vsyncpa [#allocation10], 0 }
   0x5   :  { %17 = vsyncpa [#allocation13], 0  ;;  %s1031_s18 = smov 0   ;;  %s1033_s19 = smov 0  }
   0x6   :  { %s1035_s20 = smov 0   ;;  %s1037_s21 = smov 0  }
   0x7 LB: > { %s1050_s22 = sadd.s32 4294967295, %s982_s21   ;;  %p64_p0 = scmp.ne.s32.totalorder %s974_s19, %s970_s18  ;;  %s982_s21 = sphi %s1037_s21, %s1323_s21   ;;  %s978_s20 = sphi %s1035_s20, %s1322_s20   ;;  %s974_s19 = sphi %s1033_s19, %s1321_s19   ;;  %s970_s18 = sphi %s1031_s18, %s1320_s18  }
   0x8   : > { %p1305_p1 = scmp.eq.s32.totalorder %s1050_s22, 0  ;;  %p648_p2 = scmp.ge.s32.totalorder %s982_s21, 1 }
   0x9   : > { %p159_p3 = scmp.lt.s32.totalorder %s982_s21, 5  ;;  %s984_s25 = smov [#allocation3]  }
   0xa   : > { %p1059_p5 = por %p1305_p1, %p64_p0  ;;  %s172_s26 = sshll.u32 %s984_s25, 4  ;;  %s173_s26 = int_to_ptr.vmem [resolvable:$true] %s172_s26 }
   0xb   : > { %p1063_p6 = pnand %p648_p2, %p159_p3  ;;  %s1070_s27 = sadd.s32 1, %s982_s21  }
   0xc   : > { %s1308_s23 = scalar_select %p1059_p5, 1, 0 }
   0xd   : > { %s1309_s24 = scalar_select %p1063_p6, 1, 0 }
   0xe   : > { %p694_p7 = pneg %p1063_p6  ;;  %s48_s29 = ssub.s32 %s982_s21, %s1070_s27 }
   0xf   : > { %p1080_p9 = scmp.eq.s32.totalorder %s48_s29, 0  ;;  %s51_s6 = sadd.s32 1, %s978_s20 }
  0x10   : > { %p1074_p8 = pnand %p694_p7, %p1305_p1  ;;  %s770_s9 = scalar_lea.hbm %s1299_s0, 64 }
  0x11   : > { %s1311_s30 = scalar_select %p1080_p9, 1, 0 }
  0x12   : > { %p771_p11 = scmp.ne.s32.totalorder %s1299_s0, %s770_s9  ;;  %p772_p12 = pneg %p1074_p8 }
  0x13   : > { %p777_p2 = scmp.lt.u32.totalorder %s770_s9, %s1299_s0 }
  0x14   : > { %p773_p13 = pnand %p772_p12, %p771_p11 }
  0x16   : > { %p774_p0 = pneg %p773_p13 }
  0x18   : > { %p779_p3 = pnand %p777_p2, %p774_p0 }
  0x1a   : > { %782 = shalt.err (!%p779_p3)
}
  0x1b   : > { %s783_s14 = scalar_lea.vmem %s173_s26, 64  ;;  %p791_p10 = scmp.lt.s32.totalorder %s173_s26, %s173_s26 }
  0x1c   : > { %p784_p7 = scmp.ne.s32.totalorder %s173_s26, %s783_s14  ;;  %p792_p5 = scmp.lt.s32.totalorder %s783_s14, %s783_s14 }
  0x1e   : > { %p786_p4 = pnand %p784_p7, %p772_p12  ;;  %p793_p6 = por %p792_p5, %p791_p10 }
  0x20   : > { %p787_p1 = pneg %p786_p4 }
  0x22   : > { %p794_p9 = pnand %p793_p6, %p787_p1 }
  0x24   : > { %797 = shalt.err (!%p794_p9)
}
  0x25   : > { %697 = dma.hbm_to_vmem [thread:$0]  (!%p1074_p8), %s1299_s0, 64, %s173_s26, [#allocation4]  }
  0x26   : > { %p1312_p4 = scmp.ne.s32.totalorder %s1311_s30, 0  ;;  %p59_p5 = scmp.eq.s32.totalorder %s982_s21, 0 }
  0x27   : > { %p703_p1 = scmp.lt.s32.totalorder %s982_s21, 4  ;;  %s183_s18 = sand.u32 1, %s978_s20  }
  0x28   : > { %s1106_s17 = scalar_select %p1312_p4, %s978_s20, %s51_s6  }
  0x29   : > { %s669_s25 = sshll.u32 %s982_s21, 8  ;;  %p1313_p6 = scmp.ne.s32.totalorder %s978_s20, %s974_s19 }
  0x2a   : > { %s651_s28 = sshll.u32 %s183_s18, 4  ;;  %s1118_s8 = scalar_lea.hbm %s1300_s1, %s669_s25 }
  0x2b   : > { %p60_p9 = por %p59_p5, %p1313_p6  ;;  %s187_s30 = scalar_lea.vmem [#allocation6], %s651_s28 }
  0x2c   : > { %s195_s21 = sshll.u32 %s187_s30, 4  ;;  %s184_s6 = scalar_lea.sflag [#allocation7], %s183_s18  ;;  %s1124_s21 = int_to_ptr.vmem [resolvable:$true] %s195_s21 }
  0x2d   : > { %p1120_p8 = pnand %p703_p1, %p60_p9  ;;  %s798_s9 = scalar_lea.hbm %s1118_s8, 256 }
  0x2e   : > { %p799_p10 = scmp.ne.s32.totalorder %s1118_s8, %s798_s9  ;;  %s803_s12 = scalar_lea.hbm %s1300_s1, 1024 }
  0x2f   : > { %p800_p11 = pneg %p1120_p8  ;;  %p804_p0 = scmp.lt.u32.totalorder %s1118_s8, %s1300_s1 }
  0x30   : > { %p805_p2 = scmp.lt.u32.totalorder %s803_s12, %s798_s9  ;;  %p807_p7 = scmp.lt.u32.totalorder %s798_s9, %s1118_s8 }
  0x31   : > { %p801_p12 = pnand %p800_p11, %p799_p10 }
  0x32   : > { %p806_p3 = por %p805_p2, %p804_p0 }
  0x33   : > { %p802_p13 = pneg %p801_p12 }
  0x34   : > { %p808_p4 = por %p807_p7, %p806_p3 }
  0x36   : > { %p809_p5 = pnand %p808_p4, %p802_p13 }
  0x38   : > { %812 = shalt.err (!%p809_p5)
}
  0x39   : > { %s813_s15 = scalar_lea.vmem %s1124_s21, 256  ;;  %s985_s16 = smov [#allocation6]  }
  0x3a   : > { %p814_p1 = scmp.ne.s32.totalorder %s1124_s21, %s813_s15  ;;  %s818_s18 = sshll.u32 %s985_s16, 4  ;;  %s819_s18 = int_to_ptr.vmem [resolvable:$false] %s818_s18 }
  0x3b   : > { %s820_s25 = scalar_lea.vmem %s819_s18, 512  ;;  %p821_p10 = scmp.lt.s32.totalorder %s1124_s21, %s819_s18 }
  0x3c   : > { %p816_p6 = pnand %p814_p1, %p800_p11  ;;  %p822_p12 = scmp.lt.s32.totalorder %s820_s25, %s813_s15 }
  0x3e   : > { %p817_p9 = pneg %p816_p6  ;;  %p823_p0 = por %p822_p12, %p821_p10 }
  0x40   : > { %p824_p2 = pnand %p823_p0, %p817_p9 }
  0x42   : > { %827 = shalt.err (!%p824_p2)
}
  0x43   : > { %701 = dma.hbm_to_vmem [thread:$0]  (!%p1120_p8), %s1118_s8, 256, %s1124_s21, %s184_s6  }
  0x44   : > { %p1315_p13 = scmp.ne.s32.totalorder %s1309_s24, 0 }
  0x45   : > { %p1316_p11 = scmp.eq.s32.totalorder (!%p1315_p13), %s1050_s22, 0 }
  0x46   : > { %204 = sbr.rel (%p1315_p13) target bundleno = 909 (0x38d), region = 28 }
  0x4d   : > { %949 = dma.done.wait (%p1316_p11), [#allocation4], 64   ;;  %p1317_p3 = pmov %p1316_p11 }
  0x4e   : > { %s210_s28 = sand.u32 1, %s974_s19   ;;  %p1318_p7 = scmp.ne.s32.totalorder %s1308_s23, 0 }
  0x4f   : > { %951 = vsyncadd (%p1317_p3), [#allocation4], 4294967232  ;;  %s1158_s29 = sshll.u32 %s210_s28, 4  ;;  %s211_s7 = scalar_lea.sflag [#allocation7], %s210_s28 }
  0x50   : > { %s214_s26 = scalar_lea.vmem [#allocation6], %s1158_s29 }
  0x51   : > { %953 = dma.done.wait (%p1318_p7), %s211_s7, 256  }
  0x52   : > { %955 = vsyncadd (%p1318_p7), %s211_s7, 4294967040  ;;  %p1319_p8 = scmp.ne.s32.totalorder %s1050_s22, 0 }
  0x53   : > { %v241_v0 = vld [vmem:[#allocation3] sm:$0xf] (!%p1319_p8)  ;;  %vm274_vm0 = vcmask (!%p1319_p8), 0   ;;  %v986_v2 = vmov (!%p1319_p8), 2147483647   ;;  %v987_v3 = vmov (!%p1319_p8), 0   ;;  %v258_v10 = vlaneseq (!%p1319_p8) }
  0x54   : > { %240 = sbr.rel (%p1319_p8) target bundleno = 119 (0x77), region = 40  ;;  %v242_v1 = vmul.f32 (!%p1319_p8), 100.0, %v241_v0  ;;  %275 = vst.msk [vmem:[#allocation11] sm:$0x1] (!%p1319_p8), %vm274_vm0, %v986_v2  ;;  %276 = vst.msk [vmem:[#allocation12] sm:$0x1] (!%p1319_p8), %vm274_vm0, %v987_v3 }
  0x55   : > { %vm244_vm1 = vcmask (!%p1319_p8), 60416   ;;  %v259_v13 = vshrl.u32 (!%p1319_p8), %v258_v10, 7  ;;  %vm272_vm8 = vcmask (!%p1319_p8), 57344  }
  0x56   : > { %v670_v4 = vtrunc.f32 (!%p1319_p8), %v242_v1 }
  0x58   : > { %v671_v5 = vcvt.f32.s32 (!%p1319_p8), %v670_v4 }
  0x5a   : > { %v245_v6 = vsel (!%p1319_p8), %vm244_vm1, %v671_v5, 2147483647  ;;  %257 = vst.msk [vmem:[#allocation8] sm:$0xf] (!%p1319_p8), %vm244_vm1, %v671_v5 }
  0x5b   : > { %v246_v7 = vrot.slane %v245_v6, 4 }
  0x5d   : > { %vm247_vm2 = vcmp.lt.s32.totalorder %v245_v6, %v246_v7 }
  0x5e   : > { %v248_v8 = vsel %vm247_vm2, %v245_v6, %v246_v7 }
  0x5f   : > { %v249_v9 = vrot.slane %v248_v8, 2 }
  0x61   : > { %vm250_vm3 = vcmp.lt.s32.totalorder %v248_v8, %v249_v9 }
  0x62   : > { %v251_v11 = vsel %vm250_vm3, %v248_v8, %v249_v9 }
  0x63   : > { %v252_v12 = vrot.slane %v251_v11, 1 }
  0x65   : > { %vm253_vm4 = vcmp.lt.s32.totalorder %v251_v11, %v252_v12 }
  0x66   : > { %v254_v14 = vsel %vm253_vm4, %v251_v11, %v252_v12 }
  0x67   : > { %v255_v15 = vsub.s32 %v671_v5, %v254_v14  ;;  %vm260_vm5 = vcmp.eq.s32.totalorder %v671_v5, %v254_v14 }
  0x68   : > { %v261_v16 = vsel %vm260_vm5, %v259_v13, 4 }
  0x69   : > { %256 = vst.msk [vmem:[#allocation2] sm:$0xf] %vm244_vm1, %v255_v15  ;;  %v262_v17 = vsel %vm244_vm1, %v261_v16, 2147483647 }
  0x6a   : > { %v263_v18 = vrot.slane %v262_v17, 4 }
  0x6c   : > { %vm264_vm6 = vcmp.lt.s32.totalorder %v262_v17, %v263_v18 }
  0x6d   : > { %v265_v19 = vsel %vm264_vm6, %v262_v17, %v263_v18 }
  0x6e   : > { %v266_v20 = vrot.slane %v265_v19, 2 }
  0x70   : > { %vm267_vm7 = vcmp.lt.s32.totalorder %v265_v19, %v266_v20 }
  0x71   : > { %v268_v21 = vsel %vm267_vm7, %v265_v19, %v266_v20 }
  0x72   : > { %v269_v22 = vrot.slane %v268_v21, 1 }
  0x74   : > { %vm270_vm9 = vcmp.lt.s32.totalorder %v268_v21, %v269_v22 }
  0x75   : > { %v271_v23 = vsel %vm270_vm9, %v268_v21, %v269_v22 }
  0x76   : > { %273 = vst.msk [vmem:[#allocation9] sm:$0x1] %vm272_vm8, %v271_v23 }
  0x77 PF: > { %v279_v24 = vld [vmem:[#allocation2] sm:$0xf]  ;;  %v988_v25 = vmov 2   ;;  %v989_v26 = vmov 0   ;;  %v990_v27 = vmov 3   ;;  %v991_v28 = vmov 1  }
  0x78   : > { %763 = vset.pattern.permute.xlu1 %v988_v25  ;;  %761 = vset.pattern.permute.xlu0 %v989_v26  ;;  %v992_v29 = vmov 4   ;;  %v993_v30 = vmov 5   ;;  %v994_v31 = vmov 6   ;;  %v995_v32 = vmov 7   ;;  %v277_v41 = vld [vmem:[%s214_s26] sm:$0xff]  ;;  %v278_v43 = vld [vmem:[%s214_s26 + $0x8] sm:$0xff] }
  0x79   : > { %313 = vperm.xlu1 %763, %v279_v24   ;;  %283 = vperm.xlu0 %761, %v279_v24   ;;  %v996_v33 = vmov 839922192   ;;  %v288_v35 = vlaneseq  ;;  %vm280_vm10 = vcmp.eq.s32.totalorder %v277_v41, 0  ;;  %vm281_vm11 = vcmp.eq.s32.totalorder %v278_v43, 0  ;;  %s658_s23 = sshll.u32 %s1050_s22, 9  ;;  %p705_p4 = scmp.eq.s32.totalorder %s1050_s22, 3 }
  0x7a   : > { %v286_v34 = vunpack.c.l.s4 %v996_v33  ;;  %vm294_vm12 = vcmp.eq.s32.totalorder %v277_v41, 1  ;;  %vm295_vm13 = vcmp.eq.s32.totalorder %v278_v43, 1  ;;  %vm310_vm14 = vcmp.eq.s32.totalorder %v277_v41, 2  ;;  %s997_s24 = smov [#allocation9]   ;;  %s998_s30 = smov [#allocation8]  }
  0x7b   : > { %v289_v37 = vshrl.u32 %v288_v35, 7  ;;  %vm311_vm15 = vcmp.eq.s32.totalorder %v278_v43, 2  ;;  %vm326_vm0 = vcmp.eq.s32.totalorder %v277_v41, 3  ;;  %vm327_vm1 = vcmp.eq.s32.totalorder %v278_v43, 3  ;;  %s531_s8 = sshll.u32 %s997_s24, 4  ;;  %s520_s21 = sshll.u32 %s998_s30, 4  ;;  %s532_s8 = int_to_ptr.vmem [resolvable:$true] %s531_s8  ;;  %s521_s21 = int_to_ptr.vmem [resolvable:$true] %s520_s21 }
  0x7c   : > { %v287_v36 = vunpack.c.0.s8 %v286_v34  ;;  %vm342_vm2 = vcmp.eq.s32.totalorder %v277_v41, 4  ;;  %vm343_vm3 = vcmp.eq.s32.totalorder %v278_v43, 4  ;;  %vm358_vm4 = vcmp.eq.s32.totalorder %v277_v41, 5  ;;  %s828_s6 = scalar_lea.vmem %s532_s8, 16  ;;  %s834_s9 = scalar_lea.vmem %s532_s8, 32 }
  0x7d   : > { %764 = vset.pattern.permute.xlu1 %v990_v27  ;;  %762 = vset.pattern.permute.xlu0 %v991_v28  ;;  %vm359_vm5 = vcmp.eq.s32.totalorder %v278_v43, 5  ;;  %vm374_vm6 = vcmp.eq.s32.totalorder %v277_v41, 6  ;;  %vm375_vm7 = vcmp.eq.s32.totalorder %v278_v43, 6  ;;  %vm390_vm8 = vcmp.eq.s32.totalorder %v277_v41, 7  ;;  %p829_p5 = scmp.ne.s32.totalorder %s532_s8, %s828_s6  ;;  %p835_p9 = scmp.lt.s32.totalorder %s532_s8, %s532_s8 }
  0x7e   : > { %329 = vperm.xlu1 %764, %v279_v24   ;;  %297 = vperm.xlu0 %762, %v279_v24   ;;  %v290_v40 = vsub.s32 %v287_v36, %v289_v37  ;;  %vm391_vm9 = vcmp.eq.s32.totalorder %v278_v43, 7  ;;  %v439_v23 = vand.u32 127, %v288_v35  ;;  %p836_p10 = scmp.lt.s32.totalorder %s834_s9, %s828_s6 }
  0x7f   : > { %p830_p1 = pnand %p829_p5, %p705_p4 }
  0x80   : > { %p837_p12 = por %p836_p10, %p835_p9 }
  0x81   : > { %p831_p6 = pneg %p830_p1 }
  0x82   : > { %765 = vset.pattern.permute.xlu1 %v992_v29  ;;  %766 = vset.pattern.permute.xlu0 %v993_v30 }
  0x83   : > { %345 = vperm.xlu1 %765, %v279_v24   ;;  %361 = vperm.xlu0 %766, %v279_v24   ;;  %p838_p0 = pnand %p837_p12, %p831_p6 }
  0x87   : > { %767 = vset.pattern.permute.xlu1 %v994_v31  ;;  %769 = vset.pattern.permute.xlu0 %v995_v32 }
  0x88   : > { %377 = vperm.xlu1 %767, %v279_v24  }
  0x8c   : > { %768 = vset.pattern.permute.xlu1 %v995_v32  ;;  %v443_v32 = vstv %s658_s23 }
  0x8d   : > { %393 = vperm.xlu1 %768, %v279_v24  }
  0xf8   : > { %v314_v38 = vpop.permute.xlu1 %313  ;;  %v284_v39 = vpop.permute.xlu0 %283 }
  0xf9   : > { %v291_v42 = vrot.slane %v284_v39, %v290_v40  ;;  %v321_v46 = vrot.slane %v314_v38, %v290_v40  ;;  %v440_v38 = vadd.s32 128, %v439_v23  ;;  %v441_v39 = vadd.s32 256, %v439_v23 }
  0xfb   : > { %v292_v48 = vsel %vm280_vm10, %v291_v42, 0  ;;  %v293_v49 = vsel %vm281_vm11, %v291_v42, 0  ;;  %v322_v55 = vsel %vm310_vm14, %v321_v46, 0  ;;  %v323_v56 = vsel %vm311_vm15, %v321_v46, 0 }
  0xfc   : > { %vm408_vm10 = vcmask 1043456  }
  0xfd   : > { %v330_v44 = vpop.permute.xlu1 %329  ;;  %v298_v45 = vpop.permute.xlu0 %297 }
  0xfe   : > { %v305_v47 = vrot.slane %v298_v45, %v290_v40  ;;  %v337_v50 = vrot.slane %v330_v44, %v290_v40  ;;  %v444_v44 = vadd.s32 %v443_v32, %v439_v23 }
 0x100   : > { %v306_v51 = vsel %vm294_vm12, %v305_v47, 0  ;;  %v307_v52 = vsel %vm295_vm13, %v305_v47, 0  ;;  %v338_v63 = vsel %vm326_vm0, %v337_v50, 0  ;;  %v339_v0 = vsel %vm327_vm1, %v337_v50, 0 }
 0x101   : > { %v308_v53 = vadd.s32 %v306_v51, %v292_v48  ;;  %v309_v54 = vadd.s32 %v307_v52, %v293_v49  ;;  %v445_v49 = vadd.s32 %v443_v32, %v440_v38  ;;  %v446_v50 = vadd.s32 %v443_v32, %v441_v39 }
 0x102   : > { %v346_v57 = vpop.permute.xlu1 %345  ;;  %v362_v58 = vpop.permute.xlu0 %361  ;;  %vm448_vm11 = vcmp.lt.s32.totalorder %v444_v44, 1680 }
 0x103   : > { %v324_v59 = vadd.s32 %v322_v55, %v308_v53  ;;  %v325_v60 = vadd.s32 %v323_v56, %v309_v54  ;;  %v353_v61 = vrot.slane %v346_v57, %v290_v40  ;;  %v369_v62 = vrot.slane %v362_v58, %v290_v40 }
 0x104   : > { %vm449_vm12 = vcmp.lt.s32.totalorder %v445_v49, 1680  ;;  %vm450_vm13 = vcmp.lt.s32.totalorder %v446_v50, 1680 }
 0x105   : > { %v340_v1 = vadd.s32 %v338_v63, %v324_v59  ;;  %v341_v2 = vadd.s32 %v339_v0, %v325_v60  ;;  %v354_v3 = vsel %vm342_vm2, %v353_v61, 0  ;;  %v355_v4 = vsel %vm343_vm3, %v353_v61, 0 }
 0x106   : > { %v370_v7 = vsel %vm358_vm4, %v369_v62, 0  ;;  %v371_v8 = vsel %vm359_vm5, %v369_v62, 0  ;;  %vm508_vm3 = vcmask 0  }
 0x107   : > { %v356_v5 = vadd.s32 %v354_v3, %v340_v1  ;;  %v357_v6 = vadd.s32 %v355_v4, %v341_v2  ;;  %v378_v9 = vpop.permute.xlu1 %377 }
 0x108   : > { %v385_v10 = vrot.slane %v378_v9, %v290_v40 }
 0x109   : > { %v372_v11 = vadd.s32 %v370_v7, %v356_v5  ;;  %v373_v12 = vadd.s32 %v371_v8, %v357_v6 }
 0x10a   : > { %v386_v13 = vsel %vm374_vm6, %v385_v10, 0  ;;  %v387_v14 = vsel %vm375_vm7, %v385_v10, 0 }
 0x10b   : > { %v388_v17 = vadd.s32 %v386_v13, %v372_v11  ;;  %v389_v18 = vadd.s32 %v387_v14, %v373_v12 }
 0x10c   : > { %v394_v15 = vpop.permute.xlu1 %393 }
 0x10d   : > { %v401_v16 = vrot.slane %v394_v15, %v290_v40  ;;  %v442_v40 = vadd.s32 384, %v439_v23 }
 0x10f   : > { %v402_v19 = vsel %vm390_vm8, %v401_v16, 0  ;;  %v403_v20 = vsel %vm391_vm9, %v401_v16, 0  ;;  %v447_v51 = vadd.s32 %v443_v32, %v442_v40  ;;  %v1180_v16 = vld [vmem:[#allocation11] sm:$0x1] }
 0x110   : > { %v404_v21 = vadd.s32 %v402_v19, %v388_v17  ;;  %v405_v22 = vadd.s32 %v403_v20, %v389_v18  ;;  %v510_v17 = vld [vmem:[#allocation11] sm:$0x1] }
 0x111   : > { %vm451_vm14 = vcmp.lt.s32.totalorder %v447_v51, 1680 }
 0x112   : > { %v406_v24 = vcombine.high %v404_v21, %v404_v21  ;;  %v407_v25 = vcombine.high %v405_v22, %v405_v22  ;;  %v409_v26 = vsel %vm408_vm10, %v404_v21, 0  ;;  %v423_v27 = vsel %vm408_vm10, %v405_v22, 0 }
 0x113   : > { %v410_v28 = vrot.slane %v409_v26, 4  ;;  %v424_v29 = vrot.slane %v423_v27, 4 }
 0x114   : > { %v416_v30 = vsel %vm408_vm10, %v406_v24, 0  ;;  %v430_v31 = vsel %vm408_vm10, %v407_v25, 0 }
 0x115   : > { %v411_v33 = vadd.s32 %v410_v28, %v409_v26  ;;  %v417_v34 = vrot.slane %v416_v30, 4  ;;  %v425_v36 = vadd.s32 %v424_v29, %v423_v27  ;;  %v431_v37 = vrot.slane %v430_v31, 4 }
 0x117   : > { %v412_v41 = vrot.slane %v411_v33, 2  ;;  %v418_v42 = vadd.s32 %v417_v34, %v416_v30  ;;  %v426_v43 = vrot.slane %v425_v36, 2  ;;  %v432_v35 = vadd.s32 %v431_v37, %v430_v31 }
 0x119   : > { %v413_v45 = vadd.s32 %v412_v41, %v411_v33  ;;  %v419_v46 = vrot.slane %v418_v42, 2  ;;  %v427_v47 = vadd.s32 %v426_v43, %v425_v36  ;;  %v433_v48 = vrot.slane %v432_v35, 2 }
 0x11b   : > { %v414_v52 = vrot.slane %v413_v45, 1  ;;  %v420_v53 = vadd.s32 %v419_v46, %v418_v42  ;;  %v428_v54 = vrot.slane %v427_v47, 1  ;;  %v434_v55 = vadd.s32 %v433_v48, %v432_v35 }
 0x11d   : > { %v415_v56 = vadd.s32 %v414_v52, %v413_v45  ;;  %v421_v57 = vrot.slane %v420_v53, 1  ;;  %v429_v58 = vadd.s32 %v428_v54, %v427_v47  ;;  %v435_v59 = vrot.slane %v434_v55, 1 }
 0x11f   : > { %v422_v60 = vadd.s32 %v421_v57, %v420_v53  ;;  %v436_v61 = vadd.s32 %v435_v59, %v434_v55  ;;  %v452_v62 = vsel %vm448_vm11, %v415_v56, 2147483647  ;;  %v454_v0 = vsel %vm450_vm13, %v429_v58, 2147483647 }
 0x121   : > { %v453_v63 = vsel %vm449_vm12, %v422_v60, 2147483647  ;;  %v455_v1 = vsel %vm451_vm14, %v436_v61, 2147483647 }
 0x122   : > { %vm456_vm15 = vcmp.lt.s32.totalorder %v452_v62, %v453_v63  ;;  %vm458_vm0 = vcmp.lt.s32.totalorder %v454_v0, %v455_v1 }
 0x123   : > { %v457_v2 = vsel %vm456_vm15, %v452_v62, %v453_v63  ;;  %v459_v3 = vsel %vm458_vm0, %v454_v0, %v455_v1 }
 0x124   : > { %vm460_vm1 = vcmp.lt.s32.totalorder %v457_v2, %v459_v3 }
 0x125   : > { %v461_v4 = vsel %vm460_vm1, %v457_v2, %v459_v3 }
 0x126   : > { %v463_v5 = vshra.s32 %v461_v4, 16  ;;  %v462_v7 = vand.u32 65535, %v461_v4 }
 0x128   : > { %v465_v6 = vcvt.s32.f32 %v463_v5  ;;  %v464_v9 = vcvt.s32.f32 %v462_v7 }
 0x12a   : > { %466 = vmin.xlane.f32.xlu0 %v465_v6 }
 0x1b7   : > { %v467_v8 = vpop.xlane.xlu0 %466 }
 0x1b8   : > { %vm468_vm2 = vcmp.eq.f32.partialorder %v465_v6, %v467_v8  ;;  %v473_v11 = vcvt.f32.s32 %v467_v8 }
 0x1b9   : > { %v469_v10 = vsel %vm468_vm2, %v464_v9, inf }
 0x1ba   : > { %470 = vmin.xlane.f32.xlu1 %v469_v10  ;;  %v474_v13 = vshll.u32 %v473_v11, 16 }
 0x247   : > { %v471_v12 = vpop.xlane.xlu1 %470 }
 0x248   : > { %v472_v14 = vcvt.f32.s32 %v471_v12 }
 0x24a   : > { %v1178_v15 = vadd.s32 %v474_v13, %v472_v14 }
 0x24c   : > { %vm476_vm4 = vcmp.eq.s32.totalorder %v452_v62, %v1178_v15  ;;  %vm477_vm5 = vcmp.eq.s32.totalorder %v453_v63, %v1178_v15  ;;  %vm478_vm6 = vcmp.eq.s32.totalorder %v454_v0, %v1178_v15  ;;  %vm479_vm7 = vcmp.eq.s32.totalorder %v455_v1, %v1178_v15 }
 0x24d   : > { %v480_v18 = vsel %vm476_vm4, %v444_v44, 2147483647  ;;  %v481_v19 = vsel %vm477_vm5, %v445_v49, 2147483647  ;;  %v482_v20 = vsel %vm478_vm6, %v446_v50, 2147483647  ;;  %vm505_vm8 = vcmp.lt.s32.totalorder %v1178_v15, %v1180_v16 }
 0x24e   : > { %v483_v21 = vsel %vm479_vm7, %v447_v51, 2147483647  ;;  %vm484_vm9 = vcmp.lt.s32.totalorder %v480_v18, %v481_v19  ;;  %v511_v22 = vsel %vm505_vm8, %v1178_v15, %v510_v17 }
 0x24f   : > { %v485_v23 = vsel %vm484_vm9, %v480_v18, %v481_v19  ;;  %vm486_vm10 = vcmp.lt.s32.totalorder %v482_v20, %v483_v21  ;;  %512 = vst.msk [vmem:[#allocation11] sm:$0x1] %vm508_vm3, %v511_v22 }
 0x250   : > { %v487_v24 = vsel %vm486_vm10, %v482_v20, %v483_v21 }
 0x251   : > { %vm488_vm11 = vcmp.lt.s32.totalorder %v485_v23, %v487_v24 }
 0x252   : > { %v489_v25 = vsel %vm488_vm11, %v485_v23, %v487_v24 }
 0x253   : > { %v491_v26 = vshra.s32 %v489_v25, 16  ;;  %v490_v28 = vand.u32 65535, %v489_v25 }
 0x255   : > { %v493_v27 = vcvt.s32.f32 %v491_v26  ;;  %v492_v30 = vcvt.s32.f32 %v490_v28 }
 0x257   : > { %494 = vmin.xlane.f32.xlu0 %v493_v27 }
 0x2e4   : > { %v1193_v29 = vpop.xlane.xlu0 %494 }
 0x2e5   : > { %vm496_vm12 = vcmp.eq.f32.partialorder %v493_v27, %v1193_v29 }
 0x2e6   : > { %v497_v31 = vsel %vm496_vm12, %v492_v30, inf }
 0x2e7   : > { %498 = vmin.xlane.f32.xlu0 %v497_v31 }
 0x2e8   : > { %841 = shalt.err (!%p838_p0)
}
 0x2e9   : > { %s842_s12 = scalar_lea.hbm %s1302_s3, 16 }
 0x2ea   : > { %p843_p2 = scmp.ne.s32.totalorder %s1302_s3, %s842_s12  ;;  %p848_p3 = scmp.lt.u32.totalorder %s842_s12, %s1302_s3 }
 0x2ec   : > { %p844_p13 = pnand %p843_p2, %p705_p4 }
 0x2ee   : > { %p845_p11 = pneg %p844_p13 }
 0x2f0   : > { %p850_p7 = pnand %p848_p3, %p845_p11 }
 0x2f2   : > { %853 = shalt.err (!%p850_p7)
}
 0x2f3   : > { %681 = dma.vmem_to_hbm [thread:$0]  (%p705_p4), %s532_s8, 16, %s1302_s3, [#allocation10]  }
 0x2f4   : > { %s854_s28 = scalar_lea.vmem %s521_s21, 64  ;;  %p861_p6 = scmp.lt.s32.totalorder %s521_s21, %s521_s21 }
 0x2f5   : > { %p855_p8 = scmp.ne.s32.totalorder %s521_s21, %s854_s28  ;;  %p862_p9 = scmp.lt.s32.totalorder %s854_s28, %s854_s28 }
 0x2f7   : > { %p856_p5 = pnand %p855_p8, %p705_p4  ;;  %p863_p10 = por %p862_p9, %p861_p6 }
 0x2f9   : > { %p857_p1 = pneg %p856_p5 }
 0x2fb   : > { %p864_p12 = pnand %p863_p10, %p857_p1 }
 0x2fd   : > { %867 = shalt.err (!%p864_p12)
}
 0x2fe   : > { %s868_s26 = scalar_lea.hbm %s1301_s2, 64 }
 0x2ff   : > { %p869_p0 = scmp.ne.s32.totalorder %s1301_s2, %s868_s26  ;;  %p874_p11 = scmp.lt.u32.totalorder %s868_s26, %s1301_s2 }
 0x301   : > { %p870_p2 = pnand %p869_p0, %p705_p4 }
 0x303   : > { %p871_p13 = pneg %p870_p2 }
 0x305   : > { %p876_p3 = pnand %p874_p11, %p871_p13 }
 0x307   : > { %879 = shalt.err (!%p876_p3)
}
 0x308   : > { %679 = dma.vmem_to_hbm [thread:$0]  (%p705_p4), %s521_s21, 64, %s1301_s2, [#allocation5]  }
 0x309   : > { %s999_s10 = smov [#allocation11]  }
 0x30a   : > { %s542_s11 = sshll.u32 %s999_s10, 4  ;;  %s543_s11 = int_to_ptr.vmem [resolvable:$true] %s542_s11 }
 0x30b   : > { %s880_s12 = scalar_lea.vmem %s543_s11, 16  ;;  %s886_s13 = scalar_lea.vmem %s543_s11, 32 }
 0x30c   : > { %p881_p7 = scmp.ne.s32.totalorder %s543_s11, %s880_s12  ;;  %p887_p1 = scmp.lt.s32.totalorder %s543_s11, %s543_s11 }
 0x30d   : > { %p888_p6 = scmp.lt.s32.totalorder %s886_s13, %s880_s12 }
 0x30e   : > { %p882_p8 = pnand %p881_p7, %p705_p4 }
 0x30f   : > { %p889_p9 = por %p888_p6, %p887_p1 }
 0x310   : > { %p883_p5 = pneg %p882_p8 }
 0x312   : > { %p890_p10 = pnand %p889_p9, %p883_p5 }
 0x314   : > { %893 = shalt.err (!%p890_p10)
}
 0x315   : > { %s894_s16 = scalar_lea.hbm %s1303_s4, 16 }
 0x316   : > { %p895_p12 = scmp.ne.s32.totalorder %s1303_s4, %s894_s16  ;;  %p900_p13 = scmp.lt.u32.totalorder %s894_s16, %s1303_s4 }
 0x318   : > { %p896_p0 = pnand %p895_p12, %p705_p4 }
 0x31a   : > { %p897_p2 = pneg %p896_p0 }
 0x31c   : > { %p902_p11 = pnand %p900_p13, %p897_p2 }
 0x31e   : > { %905 = shalt.err (!%p902_p11)
}
 0x31f   : > { %683 = dma.vmem_to_hbm [thread:$0]  (%p705_p4), %s543_s11, 16, %s1303_s4, [#allocation10]   ;;  %v501_v32 = vcvt.f32.s32 %v1193_v29  ;;  %v506_v37 = vld [vmem:[#allocation12] sm:$0x1] }
 0x320   : > { %s1000_s26 = smov [#allocation12]  }
 0x321   : > { %v502_v34 = vshll.u32 %v501_v32, 16  ;;  %s553_s23 = sshll.u32 %s1000_s26, 4  ;;  %s554_s23 = int_to_ptr.vmem [resolvable:$true] %s553_s23 }
 0x322   : > { %s906_s24 = scalar_lea.vmem %s554_s23, 16  ;;  %s912_s8 = scalar_lea.vmem %s554_s23, 32 }
 0x323   : > { %p907_p3 = scmp.ne.s32.totalorder %s554_s23, %s906_s24  ;;  %p913_p5 = scmp.lt.s32.totalorder %s554_s23, %s554_s23 }
 0x324   : > { %p914_p1 = scmp.lt.s32.totalorder %s912_s8, %s906_s24 }
 0x325   : > { %p908_p7 = pnand %p907_p3, %p705_p4 }
 0x326   : > { %p915_p6 = por %p914_p1, %p913_p5 }
 0x327   : > { %p909_p8 = pneg %p908_p7 }
 0x329   : > { %p916_p9 = pnand %p915_p6, %p909_p8 }
 0x374   : > { %v499_v33 = vpop.xlane.xlu0 %498 }
 0x375   : > { %v500_v36 = vcvt.f32.s32 %v499_v33 }
 0x377   : > { %v503_v38 = vadd.s32 %v502_v34, %v500_v36 }
 0x379   : > { %v507_v39 = vsel %vm505_vm8, %v503_v38, %v506_v37 }
 0x37a   : > { %509 = vst.msk [vmem:[#allocation12] sm:$0x1] %vm508_vm3, %v507_v39 }
 0x37b   : > { %919 = shalt.err (!%p916_p9)
}
 0x37c   : > { %s920_s9 = scalar_lea.hbm %s1304_s5, 16 }
 0x37d   : > { %p921_p10 = scmp.ne.s32.totalorder %s1304_s5, %s920_s9  ;;  %p926_p2 = scmp.lt.u32.totalorder %s920_s9, %s1304_s5 }
 0x37f   : > { %p922_p12 = pnand %p921_p10, %p705_p4 }
 0x381   : > { %p923_p0 = pneg %p922_p12 }
 0x383   : > { %p928_p13 = pnand %p926_p2, %p923_p0 }
 0x385   : > { %931 = shalt.err (!%p928_p13)
}
 0x386   : > { %685 = dma.vmem_to_hbm [thread:$0]  (%p705_p4), %s554_s23, 16, %s1304_s5, [#allocation13]  }
 0x387   : > { %957 = dma.done.wait (%p705_p4), [#allocation5], 64  }
 0x388   : > { %959 = vsyncadd (%p705_p4), [#allocation5], 4294967232 }
 0x389   : > { %961 = dma.done.wait (%p705_p4), [#allocation10], 32  }
 0x38a   : > { %963 = vsyncadd (%p705_p4), [#allocation10], 4294967264 }
 0x38b   : > { %965 = dma.done.wait (%p705_p4), [#allocation13], 16  }
 0x38c   : > { %967 = vsyncadd (%p705_p4), [#allocation13], 4294967280 }
 0x38d PF: > { %p20_p11 = scmp.ge.s32.totalorder %s1070_s27, 6   ;;  %s1320_s18 = smov %s974_s19 }
 0x38e   : > { %s1321_s19 = smov %s978_s20  ;;  %s1322_s20 = smov %s1106_s17 }
 0x38f   : > { %s1323_s21 = smov %s1070_s27  ;;  %22 = sbr.rel (!%p20_p11) target bundleno = 7 (0x7), region = 98 }
 0x396   :  { %578 = vsyncpa [#allocation4], 1 }
 0x397   :  { %580 = vsyncpa [#allocation4 + $0x1], 1 }
 0x398   :  { %581 = vsyncpa [#allocation7], 1 }
 0x399   :  { %583 = vsyncpa [#allocation7 + $0x1], 1 }
 0x39a   :  { %584 = vsyncpa [#allocation5], 1 }
 0x39b   :  { %586 = vsyncpa [#allocation5 + $0x1], 1 }
 0x39c   :  { %587 = vsyncpa [#allocation10], 1 }
 0x39d   :  { %588 = vsyncpa [#allocation13], 1 }

</bundles_post_ra>
